<compile_context>
chip_gen: v6e
topology: v6e:2x2x1
jax: 0.10.0
libtpu: 0.0.40
codegen_flags: <defaults>
</compile_context>

<pallas_src>
import functools

import jax
import jax.numpy as jnp
from jax import lax
from jax.experimental import pallas as pl
from jax.experimental.pallas import tpu as pltpu


def _round_up(x, m):
    return (x + m - 1) // m * m


def _recurrence_kernel(xproj_ref, h0_ref, whh_ref, hseq_ref, h_carry, *, ts):
    """One grid step == TS timesteps of h_t = tanh(xproj_t + h_{t-1} @ whh)."""
    @pl.when(pl.program_id(0) == 0)
    def _():
        h_carry[...] = h0_ref[...]

    whh = whh_ref[...]                      # resident in VMEM; hoisted load

    def step(i, h):
        pre = xproj_ref[i] + jnp.dot(h.astype(whh.dtype), whh,
                                     preferred_element_type=jnp.float32)
        h_new = jnp.tanh(pre)               # f32 activation
        hseq_ref[i] = h_new
        return h_new

    h_carry[...] = lax.fori_loop(0, ts, step, h_carry[...], unroll=True)


def _readout_kernel(h_ref, who_ref, bho_ref, out_ref):
    """Batched h2o + log_softmax over a tile of (T*B) hidden rows."""
    who = who_ref[...]
    logits = jnp.dot(h_ref[...].astype(who.dtype), who,
                     preferred_element_type=jnp.float32) + bho_ref[...]
    # Padded category lanes carry -1e30 via the bias -> exp underflows to 0,
    # so log_softmax over the real categories is unchanged (no NaN/-inf math).
    m = jnp.max(logits, axis=-1, keepdims=True)
    lse = m + jnp.log(jnp.sum(jnp.exp(logits - m), axis=-1, keepdims=True))
    out_ref[...] = logits - lse


def rnn_sequence_forward(letter_idx, h0, params, *, use_bf16=True, ts=None):
    """Run the RNN over a whole letter sequence with two Pallas kernels.

    letter_idx : (T, B) int32 — letter index per (timestep, batch row); the
                 module's input is the corresponding one-hot row vector.
    h0         : (B, H) f32   — initHidden() per batch row.
    Returns (log_probs (T, B, n_categories), final_hidden (B, H)), identical
    to applying the PyTorch module forward once per timestep.
    """
    wih, bih, whh, bhh, who, bho = params
    T, B = letter_idx.shape
    H = whh.shape[0]
    C = who.shape[1]
    C_pad = _round_up(C, 128)

    mm_dtype = jnp.bfloat16 if use_bf16 else jnp.float32
    whh_mm = whh.astype(mm_dtype)
    # Lane-dense h2o: zero-pad category columns; bias pad lanes get -1e30.
    who_p = jnp.zeros((H, C_pad), mm_dtype).at[:, :C].set(who.astype(mm_dtype))
    bho_p = jnp.full((1, C_pad), -1e30, jnp.float32).at[:, :C].set(bho[0])

    # Hoist the feed-forward term out of the recurrence:
    # one_hot(idx_t) @ wih == wih[idx_t]; also fuse the two hidden biases.
    xproj = wih[letter_idx] + (bih + bhh)          # (T, B, H) f32

    # Timesteps per grid iteration (TS = T at tutorial sizes -> one grid step).
    if ts is None:
        ts = T if T <= 32 else next(d for d in (32, 16, 8, 4, 2, 1) if T % d == 0)
    assert T % ts == 0

    # ---- Kernel 1: serial recurrence, hidden states streamed out ----------
    hseq = pl.pallas_call(
        functools.partial(_recurrence_kernel, ts=ts),
        out_shape=jax.ShapeDtypeStruct((T, B, H), jnp.float32),
        grid_spec=pltpu.PrefetchScalarGridSpec(
            num_scalar_prefetch=0,
            grid=(T // ts,),
            in_specs=[
                pl.BlockSpec((ts, B, H), lambda t: (t, 0, 0)),   # xproj, streamed over T
                pl.BlockSpec((B, H), lambda t: (0, 0)),          # h0 (read at block 0)
                pl.BlockSpec((H, H), lambda t: (0, 0)),          # whh, resident
            ],
            out_specs=pl.BlockSpec((ts, B, H), lambda t: (t, 0, 0)),
            scratch_shapes=[pltpu.VMEM((B, H), jnp.float32)],    # hidden carry
        ),
        compiler_params=pltpu.CompilerParams(
            # Time is a serial recurrence -> must stay "arbitrary".
            dimension_semantics=("arbitrary",),
        ),
    )(xproj, h0, whh_mm)

    h_final = hseq[-1]

    # ---- Kernel 2: hoisted batched readout (h2o + log_softmax) ------------
    N = T * B
    RB = 256 if N >= 256 else _round_up(N, 8)
    N_pad = _round_up(N, RB)
    h_all = hseq.reshape(N, H)
    if N_pad != N:
        h_all = jnp.concatenate(
            [h_all, jnp.zeros((N_pad - N, H), jnp.float32)], axis=0)

    out_p = pl.pallas_call(
        _readout_kernel,
        out_shape=jax.ShapeDtypeStruct((N_pad, C_pad), jnp.float32),
        grid_spec=pltpu.PrefetchScalarGridSpec(
            num_scalar_prefetch=0,
            grid=(N_pad // RB,),
            in_specs=[
                pl.BlockSpec((RB, H), lambda r: (r, 0)),         # hidden rows, tiled
                pl.BlockSpec((H, C_pad), lambda r: (0, 0)),      # who (padded), resident
                pl.BlockSpec((1, C_pad), lambda r: (0, 0)),      # bho (padded), resident
            ],
            out_specs=pl.BlockSpec((RB, C_pad), lambda r: (r, 0)),
        ),
        compiler_params=pltpu.CompilerParams(
            dimension_semantics=("parallel",),                   # rows are independent
        ),
    )(h_all, who_p, bho_p)

    log_probs = out_p[:N, :C].reshape(T, B, C)
    return log_probs, h_final


def init_params(key, input_size, hidden_size, output_size):
    """Deterministic nn.Linear-style init: U(-1/sqrt(fan_in), 1/sqrt(fan_in))."""
    ks = jax.random.split(key, 6)

    def linear(kw, kb, fan_in, fan_out):
        bound = 1.0 / jnp.sqrt(fan_in)
        w = jax.random.uniform(kw, (fan_in, fan_out), jnp.float32, -bound, bound)
        b = jax.random.uniform(kb, (1, fan_out), jnp.float32, -bound, bound)
        return w, b

    wih, bih = linear(ks[0], ks[1], input_size, hidden_size)   # i2h
    whh, bhh = linear(ks[2], ks[3], hidden_size, hidden_size)  # h2h
    who, bho = linear(ks[4], ks[5], hidden_size, output_size)  # h2o
    return wih, bih, whh, bhh, who, bho


def reference_sequence(letter_idx, h0, params):
    """Pure-JAX reference: apply the original module forward once per timestep."""
    wih, bih, whh, bhh, who, bho = params
    n_letters = wih.shape[0]

    def step(h, idx_t):
        x = jax.nn.one_hot(idx_t, n_letters, dtype=jnp.float32)  # letterToTensor
        h_new = jnp.tanh(x @ wih + bih + h @ whh + bhh)
        logits = h_new @ who + bho
        return h_new, jax.nn.log_softmax(logits, axis=1)

    h_final, outs = jax.lax.scan(step, h0, letter_idx)
    return outs, h_final


if __name__ == "__main__":
    # Shapes implied by the module: one-hot letters of size n_letters
    # (57 = len(ascii_letters + " .,;'")), hidden=128, n_categories=18 (tutorial).
    n_letters, n_hidden, n_categories = 57, 128, 18
    T, B = 16, 8   # small sequence / batch for the smoke test

    key = jax.random.PRNGKey(0)
    k_params, k_idx = jax.random.split(key)
    params = init_params(k_params, n_letters, n_hidden, n_categories)

    # A deterministic "name": one letter index per (timestep, batch row).
    letter_idx = jax.random.randint(k_idx, (T, B), 0, n_letters, dtype=jnp.int32)
    h0 = jnp.zeros((B, n_hidden), jnp.float32)     # initHidden()

    ref_probs, ref_h = reference_sequence(letter_idx, h0, params)

    # bf16 MXU operands, f32 accumulation / activations (default fast path).
    log_probs, h_final = rnn_sequence_forward(letter_idx, h0, params, use_bf16=True)
    jax.block_until_ready((log_probs, h_final))
    assert log_probs.shape == (T, B, n_categories)
    assert jnp.allclose(log_probs, ref_probs, atol=2e-2, rtol=2e-2)
    assert jnp.allclose(h_final, ref_h, atol=2e-2, rtol=2e-2)

    # Full-f32 path: tight agreement with the reference.
    log_probs32, h_final32 = rnn_sequence_forward(letter_idx, h0, params, use_bf16=False)
    jax.block_until_ready((log_probs32, h_final32))
    assert jnp.allclose(log_probs32, ref_probs, atol=5e-4, rtol=1e-4)
    assert jnp.allclose(h_final32, ref_h, atol=5e-4, rtol=1e-4)

    # T=1, B=1 is exactly one RNN.forward(letterToTensor(c), initHidden()).
    one_idx = letter_idx[:1, :1]
    one_h0 = jnp.zeros((1, n_hidden), jnp.float32)
    out1, h1 = rnn_sequence_forward(one_idx, one_h0, params, use_bf16=False)
    ref1, refh1 = reference_sequence(one_idx, one_h0, params)
    assert jnp.allclose(out1, ref1, atol=5e-4, rtol=1e-4)
    assert jnp.allclose(h1, refh1, atol=5e-4, rtol=1e-4)

    print("KERNEL_OK")
</pallas_src>

<mosaic_0001>
module attributes {stable_mosaic.version = 11 : i64} {
  func.func @_recurrence_kernel(%arg0: i32, %arg1: memref<16x8x128xf32, #tpu.memory_space<vmem>>, %arg2: memref<8x128xf32, #tpu.memory_space<vmem>>, %arg3: memref<128x128xbf16, #tpu.memory_space<vmem>>, %arg4: memref<16x8x128xf32, #tpu.memory_space<vmem>>, %arg5: memref<8x128xf32, #tpu.memory_space<vmem>>) attributes {dimension_semantics = [#tpu.dimension_semantics<arbitrary>], iteration_bounds = array<i64: 1>, scalar_prefetch = 0 : i64, scratch_operands = 1 : i64, tpu.core_type = #tpu.core_type<tc>, window_params = [{transform_indices = @transform_0, window_bounds = array<i64: 16, 8, 128>}, {pipeline_mode = #tpu.pipeline_mode<synchronous>, transform_indices = @transform_1, window_bounds = array<i64: 8, 128>}, {pipeline_mode = #tpu.pipeline_mode<synchronous>, transform_indices = @transform_2, window_bounds = array<i64: 128, 128>}, {transform_indices = @transform_3, window_bounds = array<i64: 16, 8, 128>}]} {
    %c0_i32 = arith.constant 0 : i32
    %0 = arith.cmpi eq, %arg0, %c0_i32 : i32
    %1 = arith.extui %0 : i1 to i32
    %c0_i32_0 = arith.constant 0 : i32
    %2 = arith.cmpi ne, %1, %c0_i32_0 : i32
    scf.if %2 {
      %c0_86 = arith.constant 0 : index
      %c0_87 = arith.constant 0 : index
      %182 = vector.load %arg2[%c0_86, %c0_87] : memref<8x128xf32, #tpu.memory_space<vmem>>, vector<8x128xf32>
      %c0_88 = arith.constant 0 : index
      %c0_89 = arith.constant 0 : index
      %183 = vector.load %arg5[%c0_88, %c0_89] : memref<8x128xf32, #tpu.memory_space<vmem>>, vector<8x128xf32>
      tpu.vector_store %arg5[%c0_88, %c0_89], %182 {strides = array<i32>} : memref<8x128xf32, #tpu.memory_space<vmem>>, vector<8x128xf32>,
    } else {
    }
    %c0 = arith.constant 0 : index
    %c0_1 = arith.constant 0 : index
    %3 = vector.load %arg3[%c0, %c0_1] : memref<128x128xbf16, #tpu.memory_space<vmem>>, vector<128x128xbf16>
    %c0_2 = arith.constant 0 : index
    %c0_3 = arith.constant 0 : index
    %4 = vector.load %arg5[%c0_2, %c0_3] : memref<8x128xf32, #tpu.memory_space<vmem>>, vector<8x128xf32>
    %c0_i32_4 = arith.constant 0 : i32
    %5 = arith.index_cast %c0_i32_4 : i32 to index
    %c0_5 = arith.constant 0 : index
    %c0_6 = arith.constant 0 : index
    %6 = vector.load %arg1[%5, %c0_5, %c0_6] : memref<16x8x128xf32, #tpu.memory_space<vmem>>, vector<1x8x128xf32>
    %7 = vector.shape_cast %6 : vector<1x8x128xf32> to vector<8x128xf32>
    %8 = arith.truncf %4 : vector<8x128xf32> to vector<8x128xbf16>
    %cst = arith.constant dense<0.000000e+00> : vector<8x128xf32>
    %9 = tpu.matmul %8, %3, %cst {dimension_numbers = #tpu.dot_dimension_numbers<[1], [0], [0], [1], [0, 0, 1, 1], [], []>} : vector<8x128xbf16>, vector<128x128xbf16>, vector<8x128xf32> -> vector<8x128xf32>
    %10 = arith.addf %7, %9 : vector<8x128xf32>
    %11 = math.tanh %10 : vector<8x128xf32>
    %12 = arith.index_cast %c0_i32_4 : i32 to index
    %c0_7 = arith.constant 0 : index
    %c0_8 = arith.constant 0 : index
    %13 = vector.load %arg4[%12, %c0_7, %c0_8] : memref<16x8x128xf32, #tpu.memory_space<vmem>>, vector<1x8x128xf32>
    %14 = vector.shape_cast %13 : vector<1x8x128xf32> to vector<8x128xf32>
    %15 = vector.shape_cast %11 : vector<8x128xf32> to vector<1x8x128xf32>
    tpu.vector_store %arg4[%12, %c0_7, %c0_8], %15 {strides = array<i32>} : memref<16x8x128xf32, #tpu.memory_space<vmem>>, vector<1x8x128xf32>,
    %c1_i32 = arith.constant 1 : i32
    %16 = arith.index_cast %c1_i32 : i32 to index
    %c0_9 = arith.constant 0 : index
    %c0_10 = arith.constant 0 : index
    %17 = vector.load %arg1[%16, %c0_9, %c0_10] : memref<16x8x128xf32, #tpu.memory_space<vmem>>, vector<1x8x128xf32>
    %18 = vector.shape_cast %17 : vector<1x8x128xf32> to vector<8x128xf32>
    %19 = arith.truncf %11 : vector<8x128xf32> to vector<8x128xbf16>
    %cst_11 = arith.constant dense<0.000000e+00> : vector<8x128xf32>
    %20 = tpu.matmul %19, %3, %cst_11 {dimension_numbers = #tpu.dot_dimension_numbers<[1], [0], [0], [1], [0, 0, 1, 1], [], []>} : vector<8x128xbf16>, vector<128x128xbf16>, vector<8x128xf32> -> vector<8x128xf32>
    %21 = arith.addf %18, %20 : vector<8x128xf32>
    %22 = math.tanh %21 : vector<8x128xf32>
    %23 = arith.index_cast %c1_i32 : i32 to index
    %c0_12 = arith.constant 0 : index
    %c0_13 = arith.constant 0 : index
    %24 = vector.load %arg4[%23, %c0_12, %c0_13] : memref<16x8x128xf32, #tpu.memory_space<vmem>>, vector<1x8x128xf32>
    %25 = vector.shape_cast %24 : vector<1x8x128xf32> to vector<8x128xf32>
    %26 = vector.shape_cast %22 : vector<8x128xf32> to vector<1x8x128xf32>
    tpu.vector_store %arg4[%23, %c0_12, %c0_13], %26 {strides = array<i32>} : memref<16x8x128xf32, #tpu.memory_space<vmem>>, vector<1x8x128xf32>,
    %c2_i32 = arith.constant 2 : i32
    %27 = arith.index_cast %c2_i32 : i32 to index
    %c0_14 = arith.constant 0 : index
    %c0_15 = arith.constant 0 : index
    %28 = vector.load %arg1[%27, %c0_14, %c0_15] : memref<16x8x128xf32, #tpu.memory_space<vmem>>, vector<1x8x128xf32>
    %29 = vector.shape_cast %28 : vector<1x8x128xf32> to vector<8x128xf32>
    %30 = arith.truncf %22 : vector<8x128xf32> to vector<8x128xbf16>
    %cst_16 = arith.constant dense<0.000000e+00> : vector<8x128xf32>
    %31 = tpu.matmul %30, %3, %cst_16 {dimension_numbers = #tpu.dot_dimension_numbers<[1], [0], [0], [1], [0, 0, 1, 1], [], []>} : vector<8x128xbf16>, vector<128x128xbf16>, vector<8x128xf32> -> vector<8x128xf32>
    %32 = arith.addf %29, %31 : vector<8x128xf32>
    %33 = math.tanh %32 : vector<8x128xf32>
    %34 = arith.index_cast %c2_i32 : i32 to index
    %c0_17 = arith.constant 0 : index
    %c0_18 = arith.constant 0 : index
    %35 = vector.load %arg4[%34, %c0_17, %c0_18] : memref<16x8x128xf32, #tpu.memory_space<vmem>>, vector<1x8x128xf32>
    %36 = vector.shape_cast %35 : vector<1x8x128xf32> to vector<8x128xf32>
    %37 = vector.shape_cast %33 : vector<8x128xf32> to vector<1x8x128xf32>
    tpu.vector_store %arg4[%34, %c0_17, %c0_18], %37 {strides = array<i32>} : memref<16x8x128xf32, #tpu.memory_space<vmem>>, vector<1x8x128xf32>,
    %c3_i32 = arith.constant 3 : i32
    %38 = arith.index_cast %c3_i32 : i32 to index
    %c0_19 = arith.constant 0 : index
    %c0_20 = arith.constant 0 : index
    %39 = vector.load %arg1[%38, %c0_19, %c0_20] : memref<16x8x128xf32, #tpu.memory_space<vmem>>, vector<1x8x128xf32>
    %40 = vector.shape_cast %39 : vector<1x8x128xf32> to vector<8x128xf32>
    %41 = arith.truncf %33 : vector<8x128xf32> to vector<8x128xbf16>
    %cst_21 = arith.constant dense<0.000000e+00> : vector<8x128xf32>
    %42 = tpu.matmul %41, %3, %cst_21 {dimension_numbers = #tpu.dot_dimension_numbers<[1], [0], [0], [1], [0, 0, 1, 1], [], []>} : vector<8x128xbf16>, vector<128x128xbf16>, vector<8x128xf32> -> vector<8x128xf32>
    %43 = arith.addf %40, %42 : vector<8x128xf32>
    %44 = math.tanh %43 : vector<8x128xf32>
    %45 = arith.index_cast %c3_i32 : i32 to index
    %c0_22 = arith.constant 0 : index
    %c0_23 = arith.constant 0 : index
    %46 = vector.load %arg4[%45, %c0_22, %c0_23] : memref<16x8x128xf32, #tpu.memory_space<vmem>>, vector<1x8x128xf32>
    %47 = vector.shape_cast %46 : vector<1x8x128xf32> to vector<8x128xf32>
    %48 = vector.shape_cast %44 : vector<8x128xf32> to vector<1x8x128xf32>
    tpu.vector_store %arg4[%45, %c0_22, %c0_23], %48 {strides = array<i32>} : memref<16x8x128xf32, #tpu.memory_space<vmem>>, vector<1x8x128xf32>,
    %c4_i32 = arith.constant 4 : i32
    %49 = arith.index_cast %c4_i32 : i32 to index
    %c0_24 = arith.constant 0 : index
    %c0_25 = arith.constant 0 : index
    %50 = vector.load %arg1[%49, %c0_24, %c0_25] : memref<16x8x128xf32, #tpu.memory_space<vmem>>, vector<1x8x128xf32>
    %51 = vector.shape_cast %50 : vector<1x8x128xf32> to vector<8x128xf32>
    %52 = arith.truncf %44 : vector<8x128xf32> to vector<8x128xbf16>
    %cst_26 = arith.constant dense<0.000000e+00> : vector<8x128xf32>
    %53 = tpu.matmul %52, %3, %cst_26 {dimension_numbers = #tpu.dot_dimension_numbers<[1], [0], [0], [1], [0, 0, 1, 1], [], []>} : vector<8x128xbf16>, vector<128x128xbf16>, vector<8x128xf32> -> vector<8x128xf32>
    %54 = arith.addf %51, %53 : vector<8x128xf32>
    %55 = math.tanh %54 : vector<8x128xf32>
    %56 = arith.index_cast %c4_i32 : i32 to index
    %c0_27 = arith.constant 0 : index
    %c0_28 = arith.constant 0 : index
    %57 = vector.load %arg4[%56, %c0_27, %c0_28] : memref<16x8x128xf32, #tpu.memory_space<vmem>>, vector<1x8x128xf32>
    %58 = vector.shape_cast %57 : vector<1x8x128xf32> to vector<8x128xf32>
    %59 = vector.shape_cast %55 : vector<8x128xf32> to vector<1x8x128xf32>
    tpu.vector_store %arg4[%56, %c0_27, %c0_28], %59 {strides = array<i32>} : memref<16x8x128xf32, #tpu.memory_space<vmem>>, vector<1x8x128xf32>,
    %c5_i32 = arith.constant 5 : i32
    %60 = arith.index_cast %c5_i32 : i32 to index
    %c0_29 = arith.constant 0 : index
    %c0_30 = arith.constant 0 : index
    %61 = vector.load %arg1[%60, %c0_29, %c0_30] : memref<16x8x128xf32, #tpu.memory_space<vmem>>, vector<1x8x128xf32>
    %62 = vector.shape_cast %61 : vector<1x8x128xf32> to vector<8x128xf32>
    %63 = arith.truncf %55 : vector<8x128xf32> to vector<8x128xbf16>
    %cst_31 = arith.constant dense<0.000000e+00> : vector<8x128xf32>
    %64 = tpu.matmul %63, %3, %cst_31 {dimension_numbers = #tpu.dot_dimension_numbers<[1], [0], [0], [1], [0, 0, 1, 1], [], []>} : vector<8x128xbf16>, vector<128x128xbf16>, vector<8x128xf32> -> vector<8x128xf32>
    %65 = arith.addf %62, %64 : vector<8x128xf32>
    %66 = math.tanh %65 : vector<8x128xf32>
    %67 = arith.index_cast %c5_i32 : i32 to index
    %c0_32 = arith.constant 0 : index
    %c0_33 = arith.constant 0 : index
    %68 = vector.load %arg4[%67, %c0_32, %c0_33] : memref<16x8x128xf32, #tpu.memory_space<vmem>>, vector<1x8x128xf32>
    %69 = vector.shape_cast %68 : vector<1x8x128xf32> to vector<8x128xf32>
    %70 = vector.shape_cast %66 : vector<8x128xf32> to vector<1x8x128xf32>
    tpu.vector_store %arg4[%67, %c0_32, %c0_33], %70 {strides = array<i32>} : memref<16x8x128xf32, #tpu.memory_space<vmem>>, vector<1x8x128xf32>,
    %c6_i32 = arith.constant 6 : i32
    %71 = arith.index_cast %c6_i32 : i32 to index
    %c0_34 = arith.constant 0 : index
    %c0_35 = arith.constant 0 : index
    %72 = vector.load %arg1[%71, %c0_34, %c0_35] : memref<16x8x128xf32, #tpu.memory_space<vmem>>, vector<1x8x128xf32>
    %73 = vector.shape_cast %72 : vector<1x8x128xf32> to vector<8x128xf32>
    %74 = arith.truncf %66 : vector<8x128xf32> to vector<8x128xbf16>
    %cst_36 = arith.constant dense<0.000000e+00> : vector<8x128xf32>
    %75 = tpu.matmul %74, %3, %cst_36 {dimension_numbers = #tpu.dot_dimension_numbers<[1], [0], [0], [1], [0, 0, 1, 1], [], []>} : vector<8x128xbf16>, vector<128x128xbf16>, vector<8x128xf32> -> vector<8x128xf32>
    %76 = arith.addf %73, %75 : vector<8x128xf32>
    %77 = math.tanh %76 : vector<8x128xf32>
    %78 = arith.index_cast %c6_i32 : i32 to index
    %c0_37 = arith.constant 0 : index
    %c0_38 = arith.constant 0 : index
    %79 = vector.load %arg4[%78, %c0_37, %c0_38] : memref<16x8x128xf32, #tpu.memory_space<vmem>>, vector<1x8x128xf32>
    %80 = vector.shape_cast %79 : vector<1x8x128xf32> to vector<8x128xf32>
    %81 = vector.shape_cast %77 : vector<8x128xf32> to vector<1x8x128xf32>
    tpu.vector_store %arg4[%78, %c0_37, %c0_38], %81 {strides = array<i32>} : memref<16x8x128xf32, #tpu.memory_space<vmem>>, vector<1x8x128xf32>,
    %c7_i32 = arith.constant 7 : i32
    %82 = arith.index_cast %c7_i32 : i32 to index
    %c0_39 = arith.constant 0 : index
    %c0_40 = arith.constant 0 : index
    %83 = vector.load %arg1[%82, %c0_39, %c0_40] : memref<16x8x128xf32, #tpu.memory_space<vmem>>, vector<1x8x128xf32>
    %84 = vector.shape_cast %83 : vector<1x8x128xf32> to vector<8x128xf32>
    %85 = arith.truncf %77 : vector<8x128xf32> to vector<8x128xbf16>
    %cst_41 = arith.constant dense<0.000000e+00> : vector<8x128xf32>
    %86 = tpu.matmul %85, %3, %cst_41 {dimension_numbers = #tpu.dot_dimension_numbers<[1], [0], [0], [1], [0, 0, 1, 1], [], []>} : vector<8x128xbf16>, vector<128x128xbf16>, vector<8x128xf32> -> vector<8x128xf32>
    %87 = arith.addf %84, %86 : vector<8x128xf32>
    %88 = math.tanh %87 : vector<8x128xf32>
    %89 = arith.index_cast %c7_i32 : i32 to index
    %c0_42 = arith.constant 0 : index
    %c0_43 = arith.constant 0 : index
    %90 = vector.load %arg4[%89, %c0_42, %c0_43] : memref<16x8x128xf32, #tpu.memory_space<vmem>>, vector<1x8x128xf32>
    %91 = vector.shape_cast %90 : vector<1x8x128xf32> to vector<8x128xf32>
    %92 = vector.shape_cast %88 : vector<8x128xf32> to vector<1x8x128xf32>
    tpu.vector_store %arg4[%89, %c0_42, %c0_43], %92 {strides = array<i32>} : memref<16x8x128xf32, #tpu.memory_space<vmem>>, vector<1x8x128xf32>,
    %c8_i32 = arith.constant 8 : i32
    %93 = arith.index_cast %c8_i32 : i32 to index
    %c0_44 = arith.constant 0 : index
    %c0_45 = arith.constant 0 : index
    %94 = vector.load %arg1[%93, %c0_44, %c0_45] : memref<16x8x128xf32, #tpu.memory_space<vmem>>, vector<1x8x128xf32>
    %95 = vector.shape_cast %94 : vector<1x8x128xf32> to vector<8x128xf32>
    %96 = arith.truncf %88 : vector<8x128xf32> to vector<8x128xbf16>
    %cst_46 = arith.constant dense<0.000000e+00> : vector<8x128xf32>
    %97 = tpu.matmul %96, %3, %cst_46 {dimension_numbers = #tpu.dot_dimension_numbers<[1], [0], [0], [1], [0, 0, 1, 1], [], []>} : vector<8x128xbf16>, vector<128x128xbf16>, vector<8x128xf32> -> vector<8x128xf32>
    %98 = arith.addf %95, %97 : vector<8x128xf32>
    %99 = math.tanh %98 : vector<8x128xf32>
    %100 = arith.index_cast %c8_i32 : i32 to index
    %c0_47 = arith.constant 0 : index
    %c0_48 = arith.constant 0 : index
    %101 = vector.load %arg4[%100, %c0_47, %c0_48] : memref<16x8x128xf32, #tpu.memory_space<vmem>>, vector<1x8x128xf32>
    %102 = vector.shape_cast %101 : vector<1x8x128xf32> to vector<8x128xf32>
    %103 = vector.shape_cast %99 : vector<8x128xf32> to vector<1x8x128xf32>
    tpu.vector_store %arg4[%100, %c0_47, %c0_48], %103 {strides = array<i32>} : memref<16x8x128xf32, #tpu.memory_space<vmem>>, vector<1x8x128xf32>,
    %c9_i32 = arith.constant 9 : i32
    %104 = arith.index_cast %c9_i32 : i32 to index
    %c0_49 = arith.constant 0 : index
    %c0_50 = arith.constant 0 : index
    %105 = vector.load %arg1[%104, %c0_49, %c0_50] : memref<16x8x128xf32, #tpu.memory_space<vmem>>, vector<1x8x128xf32>
    %106 = vector.shape_cast %105 : vector<1x8x128xf32> to vector<8x128xf32>
    %107 = arith.truncf %99 : vector<8x128xf32> to vector<8x128xbf16>
    %cst_51 = arith.constant dense<0.000000e+00> : vector<8x128xf32>
    %108 = tpu.matmul %107, %3, %cst_51 {dimension_numbers = #tpu.dot_dimension_numbers<[1], [0], [0], [1], [0, 0, 1, 1], [], []>} : vector<8x128xbf16>, vector<128x128xbf16>, vector<8x128xf32> -> vector<8x128xf32>
    %109 = arith.addf %106, %108 : vector<8x128xf32>
    %110 = math.tanh %109 : vector<8x128xf32>
    %111 = arith.index_cast %c9_i32 : i32 to index
    %c0_52 = arith.constant 0 : index
    %c0_53 = arith.constant 0 : index
    %112 = vector.load %arg4[%111, %c0_52, %c0_53] : memref<16x8x128xf32, #tpu.memory_space<vmem>>, vector<1x8x128xf32>
    %113 = vector.shape_cast %112 : vector<1x8x128xf32> to vector<8x128xf32>
    %114 = vector.shape_cast %110 : vector<8x128xf32> to vector<1x8x128xf32>
    tpu.vector_store %arg4[%111, %c0_52, %c0_53], %114 {strides = array<i32>} : memref<16x8x128xf32, #tpu.memory_space<vmem>>, vector<1x8x128xf32>,
    %c10_i32 = arith.constant 10 : i32
    %115 = arith.index_cast %c10_i32 : i32 to index
    %c0_54 = arith.constant 0 : index
    %c0_55 = arith.constant 0 : index
    %116 = vector.load %arg1[%115, %c0_54, %c0_55] : memref<16x8x128xf32, #tpu.memory_space<vmem>>, vector<1x8x128xf32>
    %117 = vector.shape_cast %116 : vector<1x8x128xf32> to vector<8x128xf32>
    %118 = arith.truncf %110 : vector<8x128xf32> to vector<8x128xbf16>
    %cst_56 = arith.constant dense<0.000000e+00> : vector<8x128xf32>
    %119 = tpu.matmul %118, %3, %cst_56 {dimension_numbers = #tpu.dot_dimension_numbers<[1], [0], [0], [1], [0, 0, 1, 1], [], []>} : vector<8x128xbf16>, vector<128x128xbf16>, vector<8x128xf32> -> vector<8x128xf32>
    %120 = arith.addf %117, %119 : vector<8x128xf32>
    %121 = math.tanh %120 : vector<8x128xf32>
    %122 = arith.index_cast %c10_i32 : i32 to index
    %c0_57 = arith.constant 0 : index
    %c0_58 = arith.constant 0 : index
    %123 = vector.load %arg4[%122, %c0_57, %c0_58] : memref<16x8x128xf32, #tpu.memory_space<vmem>>, vector<1x8x128xf32>
    %124 = vector.shape_cast %123 : vector<1x8x128xf32> to vector<8x128xf32>
    %125 = vector.shape_cast %121 : vector<8x128xf32> to vector<1x8x128xf32>
    tpu.vector_store %arg4[%122, %c0_57, %c0_58], %125 {strides = array<i32>} : memref<16x8x128xf32, #tpu.memory_space<vmem>>, vector<1x8x128xf32>,
    %c11_i32 = arith.constant 11 : i32
    %126 = arith.index_cast %c11_i32 : i32 to index
    %c0_59 = arith.constant 0 : index
    %c0_60 = arith.constant 0 : index
    %127 = vector.load %arg1[%126, %c0_59, %c0_60] : memref<16x8x128xf32, #tpu.memory_space<vmem>>, vector<1x8x128xf32>
    %128 = vector.shape_cast %127 : vector<1x8x128xf32> to vector<8x128xf32>
    %129 = arith.truncf %121 : vector<8x128xf32> to vector<8x128xbf16>
    %cst_61 = arith.constant dense<0.000000e+00> : vector<8x128xf32>
    %130 = tpu.matmul %129, %3, %cst_61 {dimension_numbers = #tpu.dot_dimension_numbers<[1], [0], [0], [1], [0, 0, 1, 1], [], []>} : vector<8x128xbf16>, vector<128x128xbf16>, vector<8x128xf32> -> vector<8x128xf32>
    %131 = arith.addf %128, %130 : vector<8x128xf32>
    %132 = math.tanh %131 : vector<8x128xf32>
    %133 = arith.index_cast %c11_i32 : i32 to index
    %c0_62 = arith.constant 0 : index
    %c0_63 = arith.constant 0 : index
    %134 = vector.load %arg4[%133, %c0_62, %c0_63] : memref<16x8x128xf32, #tpu.memory_space<vmem>>, vector<1x8x128xf32>
    %135 = vector.shape_cast %134 : vector<1x8x128xf32> to vector<8x128xf32>
    %136 = vector.shape_cast %132 : vector<8x128xf32> to vector<1x8x128xf32>
    tpu.vector_store %arg4[%133, %c0_62, %c0_63], %136 {strides = array<i32>} : memref<16x8x128xf32, #tpu.memory_space<vmem>>, vector<1x8x128xf32>,
    %c12_i32 = arith.constant 12 : i32
    %137 = arith.index_cast %c12_i32 : i32 to index
    %c0_64 = arith.constant 0 : index
    %c0_65 = arith.constant 0 : index
    %138 = vector.load %arg1[%137, %c0_64, %c0_65] : memref<16x8x128xf32, #tpu.memory_space<vmem>>, vector<1x8x128xf32>
    %139 = vector.shape_cast %138 : vector<1x8x128xf32> to vector<8x128xf32>
    %140 = arith.truncf %132 : vector<8x128xf32> to vector<8x128xbf16>
    %cst_66 = arith.constant dense<0.000000e+00> : vector<8x128xf32>
    %141 = tpu.matmul %140, %3, %cst_66 {dimension_numbers = #tpu.dot_dimension_numbers<[1], [0], [0], [1], [0, 0, 1, 1], [], []>} : vector<8x128xbf16>, vector<128x128xbf16>, vector<8x128xf32> -> vector<8x128xf32>
    %142 = arith.addf %139, %141 : vector<8x128xf32>
    %143 = math.tanh %142 : vector<8x128xf32>
    %144 = arith.index_cast %c12_i32 : i32 to index
    %c0_67 = arith.constant 0 : index
    %c0_68 = arith.constant 0 : index
    %145 = vector.load %arg4[%144, %c0_67, %c0_68] : memref<16x8x128xf32, #tpu.memory_space<vmem>>, vector<1x8x128xf32>
    %146 = vector.shape_cast %145 : vector<1x8x128xf32> to vector<8x128xf32>
    %147 = vector.shape_cast %143 : vector<8x128xf32> to vector<1x8x128xf32>
    tpu.vector_store %arg4[%144, %c0_67, %c0_68], %147 {strides = array<i32>} : memref<16x8x128xf32, #tpu.memory_space<vmem>>, vector<1x8x128xf32>,
    %c13_i32 = arith.constant 13 : i32
    %148 = arith.index_cast %c13_i32 : i32 to index
    %c0_69 = arith.constant 0 : index
    %c0_70 = arith.constant 0 : index
    %149 = vector.load %arg1[%148, %c0_69, %c0_70] : memref<16x8x128xf32, #tpu.memory_space<vmem>>, vector<1x8x128xf32>
    %150 = vector.shape_cast %149 : vector<1x8x128xf32> to vector<8x128xf32>
    %151 = arith.truncf %143 : vector<8x128xf32> to vector<8x128xbf16>
    %cst_71 = arith.constant dense<0.000000e+00> : vector<8x128xf32>
    %152 = tpu.matmul %151, %3, %cst_71 {dimension_numbers = #tpu.dot_dimension_numbers<[1], [0], [0], [1], [0, 0, 1, 1], [], []>} : vector<8x128xbf16>, vector<128x128xbf16>, vector<8x128xf32> -> vector<8x128xf32>
    %153 = arith.addf %150, %152 : vector<8x128xf32>
    %154 = math.tanh %153 : vector<8x128xf32>
    %155 = arith.index_cast %c13_i32 : i32 to index
    %c0_72 = arith.constant 0 : index
    %c0_73 = arith.constant 0 : index
    %156 = vector.load %arg4[%155, %c0_72, %c0_73] : memref<16x8x128xf32, #tpu.memory_space<vmem>>, vector<1x8x128xf32>
    %157 = vector.shape_cast %156 : vector<1x8x128xf32> to vector<8x128xf32>
    %158 = vector.shape_cast %154 : vector<8x128xf32> to vector<1x8x128xf32>
    tpu.vector_store %arg4[%155, %c0_72, %c0_73], %158 {strides = array<i32>} : memref<16x8x128xf32, #tpu.memory_space<vmem>>, vector<1x8x128xf32>,
    %c14_i32 = arith.constant 14 : i32
    %159 = arith.index_cast %c14_i32 : i32 to index
    %c0_74 = arith.constant 0 : index
    %c0_75 = arith.constant 0 : index
    %160 = vector.load %arg1[%159, %c0_74, %c0_75] : memref<16x8x128xf32, #tpu.memory_space<vmem>>, vector<1x8x128xf32>
    %161 = vector.shape_cast %160 : vector<1x8x128xf32> to vector<8x128xf32>
    %162 = arith.truncf %154 : vector<8x128xf32> to vector<8x128xbf16>
    %cst_76 = arith.constant dense<0.000000e+00> : vector<8x128xf32>
    %163 = tpu.matmul %162, %3, %cst_76 {dimension_numbers = #tpu.dot_dimension_numbers<[1], [0], [0], [1], [0, 0, 1, 1], [], []>} : vector<8x128xbf16>, vector<128x128xbf16>, vector<8x128xf32> -> vector<8x128xf32>
    %164 = arith.addf %161, %163 : vector<8x128xf32>
    %165 = math.tanh %164 : vector<8x128xf32>
    %166 = arith.index_cast %c14_i32 : i32 to index
    %c0_77 = arith.constant 0 : index
    %c0_78 = arith.constant 0 : index
    %167 = vector.load %arg4[%166, %c0_77, %c0_78] : memref<16x8x128xf32, #tpu.memory_space<vmem>>, vector<1x8x128xf32>
    %168 = vector.shape_cast %167 : vector<1x8x128xf32> to vector<8x128xf32>
    %169 = vector.shape_cast %165 : vector<8x128xf32> to vector<1x8x128xf32>
    tpu.vector_store %arg4[%166, %c0_77, %c0_78], %169 {strides = array<i32>} : memref<16x8x128xf32, #tpu.memory_space<vmem>>, vector<1x8x128xf32>,
    %c15_i32 = arith.constant 15 : i32
    %170 = arith.index_cast %c15_i32 : i32 to index
    %c0_79 = arith.constant 0 : index
    %c0_80 = arith.constant 0 : index
    %171 = vector.load %arg1[%170, %c0_79, %c0_80] : memref<16x8x128xf32, #tpu.memory_space<vmem>>, vector<1x8x128xf32>
    %172 = vector.shape_cast %171 : vector<1x8x128xf32> to vector<8x128xf32>
    %173 = arith.truncf %165 : vector<8x128xf32> to vector<8x128xbf16>
    %cst_81 = arith.constant dense<0.000000e+00> : vector<8x128xf32>
    %174 = tpu.matmul %173, %3, %cst_81 {dimension_numbers = #tpu.dot_dimension_numbers<[1], [0], [0], [1], [0, 0, 1, 1], [], []>} : vector<8x128xbf16>, vector<128x128xbf16>, vector<8x128xf32> -> vector<8x128xf32>
    %175 = arith.addf %172, %174 : vector<8x128xf32>
    %176 = math.tanh %175 : vector<8x128xf32>
    %177 = arith.index_cast %c15_i32 : i32 to index
    %c0_82 = arith.constant 0 : index
    %c0_83 = arith.constant 0 : index
    %178 = vector.load %arg4[%177, %c0_82, %c0_83] : memref<16x8x128xf32, #tpu.memory_space<vmem>>, vector<1x8x128xf32>
    %179 = vector.shape_cast %178 : vector<1x8x128xf32> to vector<8x128xf32>
    %180 = vector.shape_cast %176 : vector<8x128xf32> to vector<1x8x128xf32>
    tpu.vector_store %arg4[%177, %c0_82, %c0_83], %180 {strides = array<i32>} : memref<16x8x128xf32, #tpu.memory_space<vmem>>, vector<1x8x128xf32>,
    %c16_i32 = arith.constant 16 : i32
    %c0_84 = arith.constant 0 : index
    %c0_85 = arith.constant 0 : index
    %181 = vector.load %arg5[%c0_84, %c0_85] : memref<8x128xf32, #tpu.memory_space<vmem>>, vector<8x128xf32>
    tpu.vector_store %arg5[%c0_84, %c0_85], %176 {strides = array<i32>} : memref<8x128xf32, #tpu.memory_space<vmem>>, vector<8x128xf32>,
    return
  }
  func.func @transform_0(%arg0: i32) -> (i32, i32, i32) {
    %c0_i32 = arith.constant 0 : i32
    %c0_i32_0 = arith.constant 0 : i32
    %c0_i32_1 = arith.constant 0 : i32
    return %arg0, %c0_i32, %c0_i32_0 : i32, i32, i32
  }
  func.func @transform_1(%arg0: i32) -> (i32, i32) {
    %c0_i32 = arith.constant 0 : i32
    %c0_i32_0 = arith.constant 0 : i32
    %c0_i32_1 = arith.constant 0 : i32
    return %c0_i32, %c0_i32_0 : i32, i32
  }
  func.func @transform_2(%arg0: i32) -> (i32, i32) {
    %c0_i32 = arith.constant 0 : i32
    %c0_i32_0 = arith.constant 0 : i32
    %c0_i32_1 = arith.constant 0 : i32
    return %c0_i32, %c0_i32_0 : i32, i32
  }
  func.func @transform_3(%arg0: i32) -> (i32, i32, i32) {
    %c0_i32 = arith.constant 0 : i32
    %c0_i32_0 = arith.constant 0 : i32
    %c0_i32_1 = arith.constant 0 : i32
    return %arg0, %c0_i32, %c0_i32_0 : i32, i32, i32
  }
}

</mosaic_0001>

<bundles_post_ra>
// kernel: tpu_custom_call.1
= control target key start
LH: loop header
LB: loop body
LE: loop exit
PB: predicated region body
PF: predicated region fallthrough
CT: control target
= control target key end

     0   :  { %8 = vsyncpa [#allocation4], 0  ;;  %s1855_s0 = inlined_call_operand.hbm [shape: f32[16,8,128], index: 0, kind: input, shape index: {}]   ;;  %s1856_s1 = inlined_call_operand.hbm [shape: f32[8,128], index: 1, kind: input, shape index: {}]   ;;  %s1857_s2 = inlined_call_operand.hbm [shape: bf16[128,128], index: 2, kind: input, shape index: {}]   ;;  %s1858_s3 = inlined_call_operand.hbm [shape: f32[16,8,128], index: 3, kind: output, shape index: {}]  }
   0x1   :  { %9 = vsyncpa [#allocation7], 0 }
   0x2   :  { %10 = vsyncpa [#allocation5], 0  ;;  %s1503_s12 = smov [#allocation6]   ;;  %s1504_s14 = smov [#allocation3]  }
   0x3   :  { %s29_s13 = sshll.u32 %s1503_s12, 4  ;;  %s16_s15 = sshll.u32 %s1504_s14, 4  ;;  %s30_s13 = int_to_ptr.vmem [resolvable:$true] %s29_s13  ;;  %s17_s15 = int_to_ptr.vmem [resolvable:$true] %s16_s15 }
   0x4   :  { %s1425_s16 = scalar_lea.vmem %s30_s13, 128  ;;  %p1430_p1 = scmp.lt.s32.totalorder %s30_s13, %s30_s13 }
   0x5   :  { %p1426_p0 = scmp.ne.s32.totalorder %s30_s13, %s1425_s16  ;;  %p1431_p2 = scmp.lt.s32.totalorder %s1425_s16, %s1425_s16 }
   0x7   :  { %p1432_p3 = por %p1431_p2, %p1430_p1 }
   0x9   :  { %p1433_p4 = pnand %p1432_p3, %p1426_p0 }
   0xb   :  { %1436 = shalt.err (!%p1433_p4)
}
   0xc   :  { %32 = dma.hbm_to_vmem [thread:$0]  %s1856_s1, 128, %s30_s13, [#allocation7]  }
   0xd   :  { %s1445_s19 = scalar_lea.vmem %s17_s15, 2048  ;;  %p1450_p6 = scmp.lt.s32.totalorder %s17_s15, %s17_s15 }
   0xe   :  { %p1446_p5 = scmp.ne.s32.totalorder %s17_s15, %s1445_s19  ;;  %p1451_p7 = scmp.lt.s32.totalorder %s1445_s19, %s1445_s19 }
  0x10   :  { %p1452_p8 = por %p1451_p7, %p1450_p6 }
  0x12   :  { %p1453_p9 = pnand %p1452_p8, %p1446_p5 }
  0x14   :  { %1456 = shalt.err (!%p1453_p9)
}
  0x15   :  { %s1505_s20 = smov 128   ;;  %s1506_s21 = smov 8  }
  0x16   :  { %22 = dma.hbm_to_vmem [thread:$0]  %s1855_s0, 2048, %s17_s15, [#allocation4], %s1505_s20, %s1505_s20, %s1506_s21  }
  0x17   :  { %s1507_s24 = smov [#allocation8]  }
  0x18   :  { %s38_s25 = sshll.u32 %s1507_s24, 4  ;;  %s39_s25 = int_to_ptr.vmem [resolvable:$true] %s38_s25 }
  0x19   :  { %s1465_s1 = scalar_lea.vmem %s39_s25, 1024  ;;  %p1470_p11 = scmp.lt.s32.totalorder %s39_s25, %s39_s25 }
  0x1a   :  { %p1466_p10 = scmp.ne.s32.totalorder %s39_s25, %s1465_s1  ;;  %p1471_p12 = scmp.lt.s32.totalorder %s1465_s1, %s1465_s1 }
  0x1c   :  { %p1472_p13 = por %p1471_p12, %p1470_p11 }
  0x1e   :  { %p1473_p0 = pnand %p1472_p13, %p1466_p10 }
  0x20   :  { %1476 = shalt.err (!%p1473_p0)
}
  0x21   :  { %s1508_s26 = smov 64   ;;  %s1509_s27 = smov 4  }
  0x22   :  { %44 = dma.hbm_to_vmem [thread:$0]  %s1857_s2, 1024, %s39_s25, [#allocation7], %s1508_s26, %s1508_s26, %s1509_s27  }
  0x23   :  { %1497 = dma.done.wait [#allocation4], 2048  }
  0x24   :  { %1498 = vsyncadd [#allocation4], 4294965248 }
  0x25   :  { %1499 = dma.done.wait [#allocation7], 1152  }
  0x26   :  { %1500 = vsyncadd [#allocation7], 4294966144  ;;  %v1510_v0 = vmov 0.0   ;;  %vm1511_vm0 = vmmov 0   ;;  %v1551_v1 = vld [vmem:[#allocation8 + $0x38] sm:$0xff]   ;;  %v1554_v2 = vld [vmem:[#allocation8 + $0x30] sm:$0xff]  }
  0x27   :  { %1047 = vmatprep.subr.bf16.mxu0 %v1510_v0  ;;  %1063 = vmatprep.mubr.msk.bf16.mxu0 %vm1511_vm0, %v1510_v0  ;;  %v1560_v3 = vld [vmem:[#allocation8 + $0x28] sm:$0xff]   ;;  %v1566_v4 = vld [vmem:[#allocation8 + $0x20] sm:$0xff]   ;;  %v1572_v5 = vld [vmem:[#allocation8 + $0x18] sm:$0xff]   ;;  %s1512_s0 = smov [#allocation9]  }
  0x28   :  { %1067 = vmatprep.subr.bf16.mxu1 %v1510_v0  ;;  %1083 = vmatprep.mubr.msk.bf16.mxu1 %vm1511_vm0, %v1510_v0  ;;  %v1578_v6 = vld [vmem:[#allocation8 + $0x10] sm:$0xff]   ;;  %v1584_v7 = vld [vmem:[#allocation8 + $0x8] sm:$0xff]   ;;  %v1590_v8 = vld [vmem:[#allocation8] sm:$0xff]   ;;  %s882_s2 = sshll.u32 %s1512_s0, 4  ;;  %s883_s2 = int_to_ptr.vmem [resolvable:$true] %s882_s2 }
  0x29   :  { %1048 = vmatpush3.bf16.msra.mxu0 %v1551_v1  ;;  %1068 = vmatpush3.bf16.msra.mxu1 %v1551_v1  ;;  %v59_v9 = vld [vmem:[#allocation6] sm:$0xff]  ;;  %v172_v19 = vld [vmem:[#allocation3 + $0x8] sm:$0xff]  ;;  %v219_v27 = vld [vmem:[#allocation3 + $0x10] sm:$0xff]  ;;  %s1477_s30 = scalar_lea.vmem %s883_s2, 2048  ;;  %p1482_p2 = scmp.lt.s32.totalorder %s883_s2, %s883_s2 }
  0x2a   :  { %1049 = vmatprep.subr.bf16.mxu0 %v1510_v0  ;;  %1069 = vmatprep.subr.bf16.mxu1 %v1510_v0  ;;  %v79_v10 = vpack.c.bf16 %v59_v9, %v59_v9  ;;  %v78_v11 = vld [vmem:[#allocation3] sm:$0xff]  ;;  %v266_v35 = vld [vmem:[#allocation3 + $0x18] sm:$0xff]  ;;  %v360_v51 = vld [vmem:[#allocation3 + $0x28] sm:$0xff]  ;;  %p1478_p1 = scmp.ne.s32.totalorder %s883_s2, %s1477_s30  ;;  %p1483_p3 = scmp.lt.s32.totalorder %s1477_s30, %s1477_s30 }
  0x2b   :  { %v313_v43 = vld [vmem:[#allocation3 + $0x20] sm:$0xff]  ;;  %v407_v59 = vld [vmem:[#allocation3 + $0x30] sm:$0xff] }
  0x2c   :  { %p1484_p4 = por %p1483_p3, %p1482_p2 }
  0x2d   :  { %1050 = vmatpush3.bf16.msra.mxu0 %v1554_v2  ;;  %1070 = vmatpush3.bf16.msra.mxu1 %v1554_v2 }
  0x2e   :  { %1051 = vmatprep.subr.bf16.mxu0 %v1510_v0  ;;  %1071 = vmatprep.subr.bf16.mxu1 %v1510_v0  ;;  %p1485_p5 = pnand %p1484_p4, %p1478_p1 }
  0x31   :  { %1052 = vmatpush3.bf16.msra.mxu0 %v1560_v3  ;;  %1072 = vmatpush3.bf16.msra.mxu1 %v1560_v3 }
  0x32   :  { %1053 = vmatprep.subr.bf16.mxu0 %v1510_v0  ;;  %1073 = vmatprep.subr.bf16.mxu1 %v1510_v0 }
  0x35   :  { %1054 = vmatpush3.bf16.msra.mxu0 %v1566_v4  ;;  %1074 = vmatpush3.bf16.msra.mxu1 %v1566_v4 }
  0x36   :  { %1055 = vmatprep.subr.bf16.mxu0 %v1510_v0  ;;  %1075 = vmatprep.subr.bf16.mxu1 %v1510_v0 }
  0x39   :  { %1056 = vmatpush3.bf16.msra.mxu0 %v1572_v5  ;;  %1076 = vmatpush3.bf16.msra.mxu1 %v1572_v5 }
  0x3a   :  { %1057 = vmatprep.subr.bf16.mxu0 %v1510_v0  ;;  %1077 = vmatprep.subr.bf16.mxu1 %v1510_v0 }
  0x3d   :  { %1058 = vmatpush3.bf16.msra.mxu0 %v1578_v6  ;;  %1078 = vmatpush3.bf16.msra.mxu1 %v1578_v6 }
  0x3e   :  { %1059 = vmatprep.subr.bf16.mxu0 %v1510_v0  ;;  %1079 = vmatprep.subr.bf16.mxu1 %v1510_v0 }
  0x41   :  { %1060 = vmatpush3.bf16.msra.mxu0 %v1584_v7  ;;  %1080 = vmatpush3.bf16.msra.mxu1 %v1584_v7 }
  0x42   :  { %1061 = vmatprep.subr.bf16.mxu0 %v1510_v0  ;;  %1081 = vmatprep.subr.bf16.mxu1 %v1510_v0 }
  0x45   :  { %1062 = vmatpush3.bf16.msra.mxu0 %v1590_v8  ;;  %1082 = vmatpush3.bf16.msra.mxu1 %v1590_v8 }
  0x46   :  { %1087 = vmatprep.subr.bf16.mxu0 %v1510_v0  ;;  %1107 = vmatprep.subr.bf16.mxu1 %v1510_v0 }
  0x48   :  { %1064 = vmatmul.mubr.bf16.vlgmr.msra.gmra.mxu0 %v79_v10 }
  0x49   :  { %1088 = vmatpush3.bf16.msra.mxu0 %v1551_v1  ;;  %1103 = vmatprep.mubr.msk.bf16.mxu0 %vm1511_vm0, %v1510_v0 }
  0x4a   :  { %1089 = vmatprep.subr.bf16.mxu0 %v1510_v0 }
  0x4d   :  { %1090 = vmatpush3.bf16.msra.mxu0 %v1554_v2 }
  0x4e   :  { %1091 = vmatprep.subr.bf16.mxu0 %v1510_v0 }
  0x51   :  { %1092 = vmatpush3.bf16.msra.mxu0 %v1560_v3 }
  0x52   :  { %1093 = vmatprep.subr.bf16.mxu0 %v1510_v0 }
  0x55   :  { %1094 = vmatpush3.bf16.msra.mxu0 %v1566_v4 }
  0x56   :  { %1095 = vmatprep.subr.bf16.mxu0 %v1510_v0 }
  0x59   :  { %1096 = vmatpush3.bf16.msra.mxu0 %v1572_v5 }
  0x5a   :  { %1097 = vmatprep.subr.bf16.mxu0 %v1510_v0 }
  0x5d   :  { %1098 = vmatpush3.bf16.msra.mxu0 %v1578_v6 }
  0x5e   :  { %1099 = vmatprep.subr.bf16.mxu0 %v1510_v0 }
  0x61   :  { %1100 = vmatpush3.bf16.msra.mxu0 %v1584_v7 }
  0x62   :  { %1101 = vmatprep.subr.bf16.mxu0 %v1510_v0 }
  0x65   :  { %1102 = vmatpush3.bf16.msra.mxu0 %v1590_v8 }
  0x66   :  { %1127 = vmatprep.subr.bf16.mxu0 %v1510_v0 }
 0x108   :  { %v162_v12 = vpop.f32.mrf.mxu0 }
 0x109   :  { %v168_v13 = vadd.f32 %v162_v12, %v78_v11  ;;  %v454_v12 = vld [vmem:[#allocation3 + $0x38] sm:$0xff] }
 0x10a   :  { %v1065_v14 = vpop.f32.mrf.mxu0 }
 0x10b   :  { %1385 = vtanh.f32 %v168_v13 }
 0x10c   :  { %v165_v15 = vpop.f32.mrf.mxu0 }
 0x10e   :  { %v1066_v16 = vpop.f32.mrf.mxu0 }
 0x118   :  { %v1386_v17 = vpop.eup %1385 }
 0x119   :  { %170 = vst [vmem:[#allocation9] sm:$0xff] %v1386_v17  ;;  %v173_v18 = vpack.c.bf16 %v1386_v17, %v1386_v17 }
 0x11b   :  { %1084 = vmatmul.mubr.bf16.vlgmr.msra.gmra.mxu1 %v173_v18 }
 0x11c   :  { %1108 = vmatpush3.bf16.msra.mxu1 %v1551_v1  ;;  %1123 = vmatprep.mubr.msk.bf16.mxu1 %vm1511_vm0, %v1510_v0 }
 0x11d   :  { %1109 = vmatprep.subr.bf16.mxu1 %v1510_v0 }
 0x120   :  { %1110 = vmatpush3.bf16.msra.mxu1 %v1554_v2 }
 0x121   :  { %1111 = vmatprep.subr.bf16.mxu1 %v1510_v0 }
 0x124   :  { %1112 = vmatpush3.bf16.msra.mxu1 %v1560_v3 }
 0x125   :  { %1113 = vmatprep.subr.bf16.mxu1 %v1510_v0 }
 0x128   :  { %1114 = vmatpush3.bf16.msra.mxu1 %v1566_v4 }
 0x129   :  { %1115 = vmatprep.subr.bf16.mxu1 %v1510_v0 }
 0x12c   :  { %1116 = vmatpush3.bf16.msra.mxu1 %v1572_v5 }
 0x12d   :  { %1117 = vmatprep.subr.bf16.mxu1 %v1510_v0 }
 0x130   :  { %1118 = vmatpush3.bf16.msra.mxu1 %v1578_v6 }
 0x131   :  { %1119 = vmatprep.subr.bf16.mxu1 %v1510_v0 }
 0x134   :  { %1120 = vmatpush3.bf16.msra.mxu1 %v1584_v7 }
 0x135   :  { %1121 = vmatprep.subr.bf16.mxu1 %v1510_v0 }
 0x138   :  { %1122 = vmatpush3.bf16.msra.mxu1 %v1590_v8 }
 0x139   :  { %1147 = vmatprep.subr.bf16.mxu1 %v1510_v0 }
 0x1db   :  { %v208_v20 = vpop.f32.mrf.mxu1 }
 0x1dc   :  { %v214_v21 = vadd.f32 %v208_v20, %v172_v19  ;;  %v501_v20 = vld [vmem:[#allocation3 + $0x40] sm:$0xff] }
 0x1dd   :  { %v1085_v22 = vpop.f32.mrf.mxu1 }
 0x1de   :  { %1387 = vtanh.f32 %v214_v21 }
 0x1df   :  { %v211_v23 = vpop.f32.mrf.mxu1 }
 0x1e1   :  { %v1086_v24 = vpop.f32.mrf.mxu1 }
 0x1eb   :  { %v1388_v25 = vpop.eup %1387 }
 0x1ec   :  { %217 = vst [vmem:[#allocation9 + $0x8] sm:$0xff] %v1388_v25  ;;  %v220_v26 = vpack.c.bf16 %v1388_v25, %v1388_v25 }
 0x1ee   :  { %1104 = vmatmul.mubr.bf16.vlgmr.msra.gmra.mxu0 %v220_v26 }
 0x1ef   :  { %1128 = vmatpush3.bf16.msra.mxu0 %v1551_v1  ;;  %1143 = vmatprep.mubr.msk.bf16.mxu0 %vm1511_vm0, %v1510_v0 }
 0x1f0   :  { %1129 = vmatprep.subr.bf16.mxu0 %v1510_v0 }
 0x1f3   :  { %1130 = vmatpush3.bf16.msra.mxu0 %v1554_v2 }
 0x1f4   :  { %1131 = vmatprep.subr.bf16.mxu0 %v1510_v0 }
 0x1f7   :  { %1132 = vmatpush3.bf16.msra.mxu0 %v1560_v3 }
 0x1f8   :  { %1133 = vmatprep.subr.bf16.mxu0 %v1510_v0 }
 0x1fb   :  { %1134 = vmatpush3.bf16.msra.mxu0 %v1566_v4 }
 0x1fc   :  { %1135 = vmatprep.subr.bf16.mxu0 %v1510_v0 }
 0x1ff   :  { %1136 = vmatpush3.bf16.msra.mxu0 %v1572_v5 }
 0x200   :  { %1137 = vmatprep.subr.bf16.mxu0 %v1510_v0 }
 0x203   :  { %1138 = vmatpush3.bf16.msra.mxu0 %v1578_v6 }
 0x204   :  { %1139 = vmatprep.subr.bf16.mxu0 %v1510_v0 }
 0x207   :  { %1140 = vmatpush3.bf16.msra.mxu0 %v1584_v7 }
 0x208   :  { %1141 = vmatprep.subr.bf16.mxu0 %v1510_v0 }
 0x20b   :  { %1142 = vmatpush3.bf16.msra.mxu0 %v1590_v8 }
 0x20c   :  { %1167 = vmatprep.subr.bf16.mxu0 %v1510_v0 }
 0x2ae   :  { %v255_v28 = vpop.f32.mrf.mxu0 }
 0x2af   :  { %v261_v29 = vadd.f32 %v255_v28, %v219_v27  ;;  %v548_v28 = vld [vmem:[#allocation3 + $0x48] sm:$0xff] }
 0x2b0   :  { %v1105_v30 = vpop.f32.mrf.mxu0 }
 0x2b1   :  { %1389 = vtanh.f32 %v261_v29 }
 0x2b2   :  { %v258_v31 = vpop.f32.mrf.mxu0 }
 0x2b4   :  { %v1106_v32 = vpop.f32.mrf.mxu0 }
 0x2be   :  { %v1390_v33 = vpop.eup %1389 }
 0x2bf   :  { %264 = vst [vmem:[#allocation9 + $0x10] sm:$0xff] %v1390_v33  ;;  %v267_v34 = vpack.c.bf16 %v1390_v33, %v1390_v33 }
 0x2c1   :  { %1124 = vmatmul.mubr.bf16.vlgmr.msra.gmra.mxu1 %v267_v34 }
 0x2c2   :  { %1148 = vmatpush3.bf16.msra.mxu1 %v1551_v1  ;;  %1163 = vmatprep.mubr.msk.bf16.mxu1 %vm1511_vm0, %v1510_v0 }
 0x2c3   :  { %1149 = vmatprep.subr.bf16.mxu1 %v1510_v0 }
 0x2c6   :  { %1150 = vmatpush3.bf16.msra.mxu1 %v1554_v2 }
 0x2c7   :  { %1151 = vmatprep.subr.bf16.mxu1 %v1510_v0 }
 0x2ca   :  { %1152 = vmatpush3.bf16.msra.mxu1 %v1560_v3 }
 0x2cb   :  { %1153 = vmatprep.subr.bf16.mxu1 %v1510_v0 }
 0x2ce   :  { %1154 = vmatpush3.bf16.msra.mxu1 %v1566_v4 }
 0x2cf   :  { %1155 = vmatprep.subr.bf16.mxu1 %v1510_v0 }
 0x2d2   :  { %1156 = vmatpush3.bf16.msra.mxu1 %v1572_v5 }
 0x2d3   :  { %1157 = vmatprep.subr.bf16.mxu1 %v1510_v0 }
 0x2d6   :  { %1158 = vmatpush3.bf16.msra.mxu1 %v1578_v6 }
 0x2d7   :  { %1159 = vmatprep.subr.bf16.mxu1 %v1510_v0 }
 0x2da   :  { %1160 = vmatpush3.bf16.msra.mxu1 %v1584_v7 }
 0x2db   :  { %1161 = vmatprep.subr.bf16.mxu1 %v1510_v0 }
 0x2de   :  { %1162 = vmatpush3.bf16.msra.mxu1 %v1590_v8 }
 0x2df   :  { %1187 = vmatprep.subr.bf16.mxu1 %v1510_v0 }
 0x381   :  { %v302_v36 = vpop.f32.mrf.mxu1 }
 0x382   :  { %v308_v37 = vadd.f32 %v302_v36, %v266_v35  ;;  %v595_v36 = vld [vmem:[#allocation3 + $0x50] sm:$0xff] }
 0x383   :  { %v1125_v38 = vpop.f32.mrf.mxu1 }
 0x384   :  { %1391 = vtanh.f32 %v308_v37 }
 0x385   :  { %v305_v39 = vpop.f32.mrf.mxu1 }
 0x387   :  { %v1126_v40 = vpop.f32.mrf.mxu1 }
 0x391   :  { %v1392_v41 = vpop.eup %1391 }
 0x392   :  { %311 = vst [vmem:[#allocation9 + $0x18] sm:$0xff] %v1392_v41  ;;  %v314_v42 = vpack.c.bf16 %v1392_v41, %v1392_v41 }
 0x394   :  { %1144 = vmatmul.mubr.bf16.vlgmr.msra.gmra.mxu0 %v314_v42 }
 0x395   :  { %1168 = vmatpush3.bf16.msra.mxu0 %v1551_v1  ;;  %1183 = vmatprep.mubr.msk.bf16.mxu0 %vm1511_vm0, %v1510_v0 }
 0x396   :  { %1169 = vmatprep.subr.bf16.mxu0 %v1510_v0 }
 0x399   :  { %1170 = vmatpush3.bf16.msra.mxu0 %v1554_v2 }
 0x39a   :  { %1171 = vmatprep.subr.bf16.mxu0 %v1510_v0 }
 0x39d   :  { %1172 = vmatpush3.bf16.msra.mxu0 %v1560_v3 }
 0x39e   :  { %1173 = vmatprep.subr.bf16.mxu0 %v1510_v0 }
 0x3a1   :  { %1174 = vmatpush3.bf16.msra.mxu0 %v1566_v4 }
 0x3a2   :  { %1175 = vmatprep.subr.bf16.mxu0 %v1510_v0 }
 0x3a5   :  { %1176 = vmatpush3.bf16.msra.mxu0 %v1572_v5 }
 0x3a6   :  { %1177 = vmatprep.subr.bf16.mxu0 %v1510_v0 }
 0x3a9   :  { %1178 = vmatpush3.bf16.msra.mxu0 %v1578_v6 }
 0x3aa   :  { %1179 = vmatprep.subr.bf16.mxu0 %v1510_v0 }
 0x3ad   :  { %1180 = vmatpush3.bf16.msra.mxu0 %v1584_v7 }
 0x3ae   :  { %1181 = vmatprep.subr.bf16.mxu0 %v1510_v0 }
 0x3b1   :  { %1182 = vmatpush3.bf16.msra.mxu0 %v1590_v8 }
 0x3b2   :  { %1207 = vmatprep.subr.bf16.mxu0 %v1510_v0 }
 0x454   :  { %v349_v44 = vpop.f32.mrf.mxu0 }
 0x455   :  { %v355_v45 = vadd.f32 %v349_v44, %v313_v43  ;;  %v642_v44 = vld [vmem:[#allocation3 + $0x58] sm:$0xff] }
 0x456   :  { %v1145_v46 = vpop.f32.mrf.mxu0 }
 0x457   :  { %1393 = vtanh.f32 %v355_v45 }
 0x458   :  { %v352_v47 = vpop.f32.mrf.mxu0 }
 0x45a   :  { %v1146_v48 = vpop.f32.mrf.mxu0 }
 0x464   :  { %v1394_v49 = vpop.eup %1393 }
 0x465   :  { %358 = vst [vmem:[#allocation9 + $0x20] sm:$0xff] %v1394_v49  ;;  %v361_v50 = vpack.c.bf16 %v1394_v49, %v1394_v49 }
 0x467   :  { %1164 = vmatmul.mubr.bf16.vlgmr.msra.gmra.mxu1 %v361_v50 }
 0x468   :  { %1188 = vmatpush3.bf16.msra.mxu1 %v1551_v1  ;;  %1203 = vmatprep.mubr.msk.bf16.mxu1 %vm1511_vm0, %v1510_v0 }
 0x469   :  { %1189 = vmatprep.subr.bf16.mxu1 %v1510_v0 }
 0x46c   :  { %1190 = vmatpush3.bf16.msra.mxu1 %v1554_v2 }
 0x46d   :  { %1191 = vmatprep.subr.bf16.mxu1 %v1510_v0 }
 0x470   :  { %1192 = vmatpush3.bf16.msra.mxu1 %v1560_v3 }
 0x471   :  { %1193 = vmatprep.subr.bf16.mxu1 %v1510_v0 }
 0x474   :  { %1194 = vmatpush3.bf16.msra.mxu1 %v1566_v4 }
 0x475   :  { %1195 = vmatprep.subr.bf16.mxu1 %v1510_v0 }
 0x478   :  { %1196 = vmatpush3.bf16.msra.mxu1 %v1572_v5 }
 0x479   :  { %1197 = vmatprep.subr.bf16.mxu1 %v1510_v0 }
 0x47c   :  { %1198 = vmatpush3.bf16.msra.mxu1 %v1578_v6 }
 0x47d   :  { %1199 = vmatprep.subr.bf16.mxu1 %v1510_v0 }
 0x480   :  { %1200 = vmatpush3.bf16.msra.mxu1 %v1584_v7 }
 0x481   :  { %1201 = vmatprep.subr.bf16.mxu1 %v1510_v0 }
 0x484   :  { %1202 = vmatpush3.bf16.msra.mxu1 %v1590_v8 }
 0x485   :  { %1227 = vmatprep.subr.bf16.mxu1 %v1510_v0 }
 0x527   :  { %v396_v52 = vpop.f32.mrf.mxu1 }
 0x528   :  { %v402_v53 = vadd.f32 %v396_v52, %v360_v51  ;;  %v689_v52 = vld [vmem:[#allocation3 + $0x60] sm:$0xff] }
 0x529   :  { %v1165_v54 = vpop.f32.mrf.mxu1 }
 0x52a   :  { %1395 = vtanh.f32 %v402_v53 }
 0x52b   :  { %v399_v55 = vpop.f32.mrf.mxu1 }
 0x52d   :  { %v1166_v56 = vpop.f32.mrf.mxu1 }
 0x537   :  { %v1396_v57 = vpop.eup %1395 }
 0x538   :  { %405 = vst [vmem:[#allocation9 + $0x28] sm:$0xff] %v1396_v57  ;;  %v408_v58 = vpack.c.bf16 %v1396_v57, %v1396_v57 }
 0x53a   :  { %1184 = vmatmul.mubr.bf16.vlgmr.msra.gmra.mxu0 %v408_v58 }
 0x53b   :  { %1208 = vmatpush3.bf16.msra.mxu0 %v1551_v1  ;;  %1223 = vmatprep.mubr.msk.bf16.mxu0 %vm1511_vm0, %v1510_v0 }
 0x53c   :  { %1209 = vmatprep.subr.bf16.mxu0 %v1510_v0 }
 0x53f   :  { %1210 = vmatpush3.bf16.msra.mxu0 %v1554_v2 }
 0x540   :  { %1211 = vmatprep.subr.bf16.mxu0 %v1510_v0 }
 0x543   :  { %1212 = vmatpush3.bf16.msra.mxu0 %v1560_v3 }
 0x544   :  { %1213 = vmatprep.subr.bf16.mxu0 %v1510_v0 }
 0x547   :  { %1214 = vmatpush3.bf16.msra.mxu0 %v1566_v4 }
 0x548   :  { %1215 = vmatprep.subr.bf16.mxu0 %v1510_v0 }
 0x54b   :  { %1216 = vmatpush3.bf16.msra.mxu0 %v1572_v5 }
 0x54c   :  { %1217 = vmatprep.subr.bf16.mxu0 %v1510_v0 }
 0x54f   :  { %1218 = vmatpush3.bf16.msra.mxu0 %v1578_v6 }
 0x550   :  { %1219 = vmatprep.subr.bf16.mxu0 %v1510_v0 }
 0x553   :  { %1220 = vmatpush3.bf16.msra.mxu0 %v1584_v7 }
 0x554   :  { %1221 = vmatprep.subr.bf16.mxu0 %v1510_v0 }
 0x557   :  { %1222 = vmatpush3.bf16.msra.mxu0 %v1590_v8 }
 0x558   :  { %1247 = vmatprep.subr.bf16.mxu0 %v1510_v0 }
 0x5fa   :  { %v443_v60 = vpop.f32.mrf.mxu0 }
 0x5fb   :  { %v449_v61 = vadd.f32 %v443_v60, %v407_v59 }
 0x5fc   :  { %v1185_v62 = vpop.f32.mrf.mxu0 }
 0x5fd   :  { %1397 = vtanh.f32 %v449_v61 }
 0x5fe   :  { %v446_v63 = vpop.f32.mrf.mxu0 }
 0x600   :  { %v1186_v9 = vpop.f32.mrf.mxu0 }
 0x60a   :  { %v1398_v10 = vpop.eup %1397 }
 0x60b   :  { %452 = vst [vmem:[#allocation9 + $0x30] sm:$0xff] %v1398_v10  ;;  %v455_v11 = vpack.c.bf16 %v1398_v10, %v1398_v10 }
 0x60d   :  { %1204 = vmatmul.mubr.bf16.vlgmr.msra.gmra.mxu1 %v455_v11 }
 0x60e   :  { %1228 = vmatpush3.bf16.msra.mxu1 %v1551_v1  ;;  %1243 = vmatprep.mubr.msk.bf16.mxu1 %vm1511_vm0, %v1510_v0 }
 0x60f   :  { %1229 = vmatprep.subr.bf16.mxu1 %v1510_v0 }
 0x612   :  { %1230 = vmatpush3.bf16.msra.mxu1 %v1554_v2 }
 0x613   :  { %1231 = vmatprep.subr.bf16.mxu1 %v1510_v0 }
 0x616   :  { %1232 = vmatpush3.bf16.msra.mxu1 %v1560_v3 }
 0x617   :  { %1233 = vmatprep.subr.bf16.mxu1 %v1510_v0 }
 0x61a   :  { %1234 = vmatpush3.bf16.msra.mxu1 %v1566_v4 }
 0x61b   :  { %1235 = vmatprep.subr.bf16.mxu1 %v1510_v0 }
 0x61e   :  { %1236 = vmatpush3.bf16.msra.mxu1 %v1572_v5 }
 0x61f   :  { %1237 = vmatprep.subr.bf16.mxu1 %v1510_v0 }
 0x622   :  { %1238 = vmatpush3.bf16.msra.mxu1 %v1578_v6 }
 0x623   :  { %1239 = vmatprep.subr.bf16.mxu1 %v1510_v0 }
 0x626   :  { %1240 = vmatpush3.bf16.msra.mxu1 %v1584_v7 }
 0x627   :  { %1241 = vmatprep.subr.bf16.mxu1 %v1510_v0 }
 0x62a   :  { %1242 = vmatpush3.bf16.msra.mxu1 %v1590_v8 }
 0x62b   :  { %1267 = vmatprep.subr.bf16.mxu1 %v1510_v0 }
 0x6cd   :  { %v490_v13 = vpop.f32.mrf.mxu1 }
 0x6ce   :  { %v496_v14 = vadd.f32 %v490_v13, %v454_v12  ;;  %v830_v12 = vld [vmem:[#allocation3 + $0x78] sm:$0xff] }
 0x6cf   :  { %v1205_v15 = vpop.f32.mrf.mxu1 }
 0x6d0   :  { %1399 = vtanh.f32 %v496_v14 }
 0x6d1   :  { %v493_v16 = vpop.f32.mrf.mxu1 }
 0x6d3   :  { %v1206_v17 = vpop.f32.mrf.mxu1 }
 0x6dd   :  { %v1400_v18 = vpop.eup %1399 }
 0x6de   :  { %499 = vst [vmem:[#allocation9 + $0x38] sm:$0xff] %v1400_v18  ;;  %v502_v19 = vpack.c.bf16 %v1400_v18, %v1400_v18 }
 0x6e0   :  { %1224 = vmatmul.mubr.bf16.vlgmr.msra.gmra.mxu0 %v502_v19 }
 0x6e1   :  { %1248 = vmatpush3.bf16.msra.mxu0 %v1551_v1  ;;  %1263 = vmatprep.mubr.msk.bf16.mxu0 %vm1511_vm0, %v1510_v0 }
 0x6e2   :  { %1249 = vmatprep.subr.bf16.mxu0 %v1510_v0 }
 0x6e5   :  { %1250 = vmatpush3.bf16.msra.mxu0 %v1554_v2 }
 0x6e6   :  { %1251 = vmatprep.subr.bf16.mxu0 %v1510_v0 }
 0x6e9   :  { %1252 = vmatpush3.bf16.msra.mxu0 %v1560_v3 }
 0x6ea   :  { %1253 = vmatprep.subr.bf16.mxu0 %v1510_v0 }
 0x6ed   :  { %1254 = vmatpush3.bf16.msra.mxu0 %v1566_v4 }
 0x6ee   :  { %1255 = vmatprep.subr.bf16.mxu0 %v1510_v0 }
 0x6f1   :  { %1256 = vmatpush3.bf16.msra.mxu0 %v1572_v5 }
 0x6f2   :  { %1257 = vmatprep.subr.bf16.mxu0 %v1510_v0 }
 0x6f5   :  { %1258 = vmatpush3.bf16.msra.mxu0 %v1578_v6 }
 0x6f6   :  { %1259 = vmatprep.subr.bf16.mxu0 %v1510_v0 }
 0x6f9   :  { %1260 = vmatpush3.bf16.msra.mxu0 %v1584_v7 }
 0x6fa   :  { %1261 = vmatprep.subr.bf16.mxu0 %v1510_v0 }
 0x6fd   :  { %1262 = vmatpush3.bf16.msra.mxu0 %v1590_v8 }
 0x6fe   :  { %1287 = vmatprep.subr.bf16.mxu0 %v1510_v0 }
 0x7a0   :  { %v537_v21 = vpop.f32.mrf.mxu0 }
 0x7a1   :  { %v543_v22 = vadd.f32 %v537_v21, %v501_v20 }
 0x7a2   :  { %v1225_v23 = vpop.f32.mrf.mxu0 }
 0x7a3   :  { %1401 = vtanh.f32 %v543_v22 }
 0x7a4   :  { %v540_v24 = vpop.f32.mrf.mxu0 }
 0x7a6   :  { %v1226_v25 = vpop.f32.mrf.mxu0 }
 0x7b0   :  { %v1402_v26 = vpop.eup %1401 }
 0x7b1   :  { %546 = vst [vmem:[#allocation9 + $0x40] sm:$0xff] %v1402_v26  ;;  %v549_v27 = vpack.c.bf16 %v1402_v26, %v1402_v26 }
 0x7b3   :  { %1244 = vmatmul.mubr.bf16.vlgmr.msra.gmra.mxu1 %v549_v27 }
 0x7b4   :  { %1268 = vmatpush3.bf16.msra.mxu1 %v1551_v1  ;;  %1283 = vmatprep.mubr.msk.bf16.mxu1 %vm1511_vm0, %v1510_v0 }
 0x7b5   :  { %1269 = vmatprep.subr.bf16.mxu1 %v1510_v0 }
 0x7b8   :  { %1270 = vmatpush3.bf16.msra.mxu1 %v1554_v2 }
 0x7b9   :  { %1271 = vmatprep.subr.bf16.mxu1 %v1510_v0 }
 0x7bc   :  { %1272 = vmatpush3.bf16.msra.mxu1 %v1560_v3 }
 0x7bd   :  { %1273 = vmatprep.subr.bf16.mxu1 %v1510_v0 }
 0x7c0   :  { %1274 = vmatpush3.bf16.msra.mxu1 %v1566_v4 }
 0x7c1   :  { %1275 = vmatprep.subr.bf16.mxu1 %v1510_v0 }
 0x7c4   :  { %1276 = vmatpush3.bf16.msra.mxu1 %v1572_v5 }
 0x7c5   :  { %1277 = vmatprep.subr.bf16.mxu1 %v1510_v0 }
 0x7c8   :  { %1278 = vmatpush3.bf16.msra.mxu1 %v1578_v6 }
 0x7c9   :  { %1279 = vmatprep.subr.bf16.mxu1 %v1510_v0 }
 0x7cc   :  { %1280 = vmatpush3.bf16.msra.mxu1 %v1584_v7 }
 0x7cd   :  { %1281 = vmatprep.subr.bf16.mxu1 %v1510_v0 }
 0x7d0   :  { %1282 = vmatpush3.bf16.msra.mxu1 %v1590_v8 }
 0x7d1   :  { %1307 = vmatprep.subr.bf16.mxu1 %v1510_v0 }
 0x873   :  { %v584_v29 = vpop.f32.mrf.mxu1 }
 0x874   :  { %v590_v30 = vadd.f32 %v584_v29, %v548_v28 }
 0x875   :  { %v1245_v31 = vpop.f32.mrf.mxu1 }
 0x876   :  { %1403 = vtanh.f32 %v590_v30 }
 0x877   :  { %v587_v32 = vpop.f32.mrf.mxu1 }
 0x879   :  { %v1246_v33 = vpop.f32.mrf.mxu1 }
 0x883   :  { %v1404_v34 = vpop.eup %1403 }
 0x884   :  { %593 = vst [vmem:[#allocation9 + $0x48] sm:$0xff] %v1404_v34  ;;  %v596_v35 = vpack.c.bf16 %v1404_v34, %v1404_v34 }
 0x886   :  { %1264 = vmatmul.mubr.bf16.vlgmr.msra.gmra.mxu0 %v596_v35 }
 0x887   :  { %1288 = vmatpush3.bf16.msra.mxu0 %v1551_v1  ;;  %1303 = vmatprep.mubr.msk.bf16.mxu0 %vm1511_vm0, %v1510_v0 }
 0x888   :  { %1289 = vmatprep.subr.bf16.mxu0 %v1510_v0 }
 0x88b   :  { %1290 = vmatpush3.bf16.msra.mxu0 %v1554_v2 }
 0x88c   :  { %1291 = vmatprep.subr.bf16.mxu0 %v1510_v0 }
 0x88f   :  { %1292 = vmatpush3.bf16.msra.mxu0 %v1560_v3 }
 0x890   :  { %1293 = vmatprep.subr.bf16.mxu0 %v1510_v0 }
 0x893   :  { %1294 = vmatpush3.bf16.msra.mxu0 %v1566_v4 }
 0x894   :  { %1295 = vmatprep.subr.bf16.mxu0 %v1510_v0 }
 0x897   :  { %1296 = vmatpush3.bf16.msra.mxu0 %v1572_v5 }
 0x898   :  { %1297 = vmatprep.subr.bf16.mxu0 %v1510_v0 }
 0x89b   :  { %1298 = vmatpush3.bf16.msra.mxu0 %v1578_v6 }
 0x89c   :  { %1299 = vmatprep.subr.bf16.mxu0 %v1510_v0 }
 0x89f   :  { %1300 = vmatpush3.bf16.msra.mxu0 %v1584_v7 }
 0x8a0   :  { %1301 = vmatprep.subr.bf16.mxu0 %v1510_v0 }
 0x8a3   :  { %1302 = vmatpush3.bf16.msra.mxu0 %v1590_v8 }
 0x8a4   :  { %1327 = vmatprep.subr.bf16.mxu0 %v1510_v0 }
 0x946   :  { %v631_v37 = vpop.f32.mrf.mxu0 }
 0x947   :  { %v637_v38 = vadd.f32 %v631_v37, %v595_v36 }
 0x948   :  { %v1265_v39 = vpop.f32.mrf.mxu0 }
 0x949   :  { %1405 = vtanh.f32 %v637_v38 }
 0x94a   :  { %v634_v40 = vpop.f32.mrf.mxu0 }
 0x94c   :  { %v1266_v41 = vpop.f32.mrf.mxu0 }
 0x956   :  { %v1406_v42 = vpop.eup %1405 }
 0x957   :  { %640 = vst [vmem:[#allocation9 + $0x50] sm:$0xff] %v1406_v42  ;;  %v643_v43 = vpack.c.bf16 %v1406_v42, %v1406_v42 }
 0x959   :  { %1284 = vmatmul.mubr.bf16.vlgmr.msra.gmra.mxu1 %v643_v43 }
 0x95a   :  { %1308 = vmatpush3.bf16.msra.mxu1 %v1551_v1  ;;  %1323 = vmatprep.mubr.msk.bf16.mxu1 %vm1511_vm0, %v1510_v0 }
 0x95b   :  { %1309 = vmatprep.subr.bf16.mxu1 %v1510_v0 }
 0x95e   :  { %1310 = vmatpush3.bf16.msra.mxu1 %v1554_v2 }
 0x95f   :  { %1311 = vmatprep.subr.bf16.mxu1 %v1510_v0 }
 0x962   :  { %1312 = vmatpush3.bf16.msra.mxu1 %v1560_v3 }
 0x963   :  { %1313 = vmatprep.subr.bf16.mxu1 %v1510_v0 }
 0x966   :  { %1314 = vmatpush3.bf16.msra.mxu1 %v1566_v4 }
 0x967   :  { %1315 = vmatprep.subr.bf16.mxu1 %v1510_v0 }
 0x96a   :  { %1316 = vmatpush3.bf16.msra.mxu1 %v1572_v5 }
 0x96b   :  { %1317 = vmatprep.subr.bf16.mxu1 %v1510_v0 }
 0x96e   :  { %1318 = vmatpush3.bf16.msra.mxu1 %v1578_v6 }
 0x96f   :  { %1319 = vmatprep.subr.bf16.mxu1 %v1510_v0 }
 0x972   :  { %1320 = vmatpush3.bf16.msra.mxu1 %v1584_v7 }
 0x973   :  { %1321 = vmatprep.subr.bf16.mxu1 %v1510_v0 }
 0x976   :  { %1322 = vmatpush3.bf16.msra.mxu1 %v1590_v8 }
 0x977   :  { %1347 = vmatprep.subr.bf16.mxu1 %v1510_v0 }
 0xa19   :  { %v678_v45 = vpop.f32.mrf.mxu1 }
 0xa1a   :  { %v684_v46 = vadd.f32 %v678_v45, %v642_v44 }
 0xa1b   :  { %v1285_v47 = vpop.f32.mrf.mxu1 }
 0xa1c   :  { %1407 = vtanh.f32 %v684_v46 }
 0xa1d   :  { %v681_v48 = vpop.f32.mrf.mxu1 }
 0xa1f   :  { %v1286_v49 = vpop.f32.mrf.mxu1 }
 0xa29   :  { %v1408_v50 = vpop.eup %1407 }
 0xa2a   :  { %687 = vst [vmem:[#allocation9 + $0x58] sm:$0xff] %v1408_v50  ;;  %v690_v51 = vpack.c.bf16 %v1408_v50, %v1408_v50 }
 0xa2c   :  { %1304 = vmatmul.mubr.bf16.vlgmr.msra.gmra.mxu0 %v690_v51 }
 0xa2d   :  { %1328 = vmatpush3.bf16.msra.mxu0 %v1551_v1  ;;  %1343 = vmatprep.mubr.msk.bf16.mxu0 %vm1511_vm0, %v1510_v0 }
 0xa2e   :  { %1329 = vmatprep.subr.bf16.mxu0 %v1510_v0 }
 0xa31   :  { %1330 = vmatpush3.bf16.msra.mxu0 %v1554_v2 }
 0xa32   :  { %1331 = vmatprep.subr.bf16.mxu0 %v1510_v0 }
 0xa35   :  { %1332 = vmatpush3.bf16.msra.mxu0 %v1560_v3 }
 0xa36   :  { %1333 = vmatprep.subr.bf16.mxu0 %v1510_v0 }
 0xa39   :  { %1334 = vmatpush3.bf16.msra.mxu0 %v1566_v4 }
 0xa3a   :  { %1335 = vmatprep.subr.bf16.mxu0 %v1510_v0 }
 0xa3d   :  { %1336 = vmatpush3.bf16.msra.mxu0 %v1572_v5 }
 0xa3e   :  { %1337 = vmatprep.subr.bf16.mxu0 %v1510_v0 }
 0xa41   :  { %1338 = vmatpush3.bf16.msra.mxu0 %v1578_v6 }
 0xa42   :  { %1339 = vmatprep.subr.bf16.mxu0 %v1510_v0 }
 0xa45   :  { %1340 = vmatpush3.bf16.msra.mxu0 %v1584_v7 }
 0xa46   :  { %1341 = vmatprep.subr.bf16.mxu0 %v1510_v0 }
 0xa49   :  { %1342 = vmatpush3.bf16.msra.mxu0 %v1590_v8 }
 0xaec   :  { %v725_v53 = vpop.f32.mrf.mxu0 }
 0xaed   :  { %v731_v54 = vadd.f32 %v725_v53, %v689_v52 }
 0xaee   :  { %v1305_v55 = vpop.f32.mrf.mxu0 }
 0xaef   :  { %1409 = vtanh.f32 %v731_v54 }
 0xaf0   :  { %v728_v56 = vpop.f32.mrf.mxu0 }
 0xaf2   :  { %v1306_v57 = vpop.f32.mrf.mxu0 }
 0xafc   :  { %v1410_v58 = vpop.eup %1409 }
 0xafd   :  { %734 = vst [vmem:[#allocation9 + $0x60] sm:$0xff] %v1410_v58  ;;  %v737_v59 = vpack.c.bf16 %v1410_v58, %v1410_v58 }
 0xaff   :  { %1324 = vmatmul.mubr.bf16.vlgmr.msra.gmra.mxu1 %v737_v59 }
 0xb00   :  { %1348 = vmatpush3.bf16.msra.mxu1 %v1551_v1  ;;  %1363 = vmatprep.mubr.msk.bf16.mxu1 %vm1511_vm0, %v1510_v0  ;;  %v736_v1 = vld [vmem:[#allocation3 + $0x68] sm:$0xff] }
 0xb01   :  { %1349 = vmatprep.subr.bf16.mxu1 %v1510_v0 }
 0xb04   :  { %1350 = vmatpush3.bf16.msra.mxu1 %v1554_v2 }
 0xb05   :  { %1351 = vmatprep.subr.bf16.mxu1 %v1510_v0 }
 0xb08   :  { %1352 = vmatpush3.bf16.msra.mxu1 %v1560_v3 }
 0xb09   :  { %1353 = vmatprep.subr.bf16.mxu1 %v1510_v0 }
 0xb0c   :  { %1354 = vmatpush3.bf16.msra.mxu1 %v1566_v4 }
 0xb0d   :  { %1355 = vmatprep.subr.bf16.mxu1 %v1510_v0 }
 0xb10   :  { %1356 = vmatpush3.bf16.msra.mxu1 %v1572_v5 }
 0xb11   :  { %1357 = vmatprep.subr.bf16.mxu1 %v1510_v0 }
 0xb14   :  { %1358 = vmatpush3.bf16.msra.mxu1 %v1578_v6  ;;  %v783_v6 = vld [vmem:[#allocation3 + $0x70] sm:$0xff] }
 0xb15   :  { %1359 = vmatprep.subr.bf16.mxu1 %v1510_v0 }
 0xb18   :  { %1360 = vmatpush3.bf16.msra.mxu1 %v1584_v7 }
 0xb19   :  { %1361 = vmatprep.subr.bf16.mxu1 %v1510_v0 }
 0xb1c   :  { %1362 = vmatpush3.bf16.msra.mxu1 %v1590_v8 }
 0xbbf   :  { %v772_v2 = vpop.f32.mrf.mxu1 }
 0xbc0   :  { %v778_v3 = vadd.f32 %v772_v2, %v736_v1 }
 0xbc1   :  { %v1325_v4 = vpop.f32.mrf.mxu1 }
 0xbc2   :  { %1411 = vtanh.f32 %v778_v3 }
 0xbc3   :  { %v775_v60 = vpop.f32.mrf.mxu1 }
 0xbc5   :  { %v1326_v61 = vpop.f32.mrf.mxu1 }
 0xbcf   :  { %v1412_v5 = vpop.eup %1411 }
 0xbd0   :  { %781 = vst [vmem:[#allocation9 + $0x68] sm:$0xff] %v1412_v5  ;;  %v784_v62 = vpack.c.bf16 %v1412_v5, %v1412_v5 }
 0xbd2   :  { %1344 = vmatmul.mubr.bf16.vlgmr.msra.gmra.mxu0 %v784_v62 }
 0xc92   :  { %v819_v63 = vpop.f32.mrf.mxu0 }
 0xc93   :  { %v825_v9 = vadd.f32 %v819_v63, %v783_v6 }
 0xc94   :  { %v1345_v10 = vpop.f32.mrf.mxu0 }
 0xc95   :  { %1413 = vtanh.f32 %v825_v9 }
 0xc96   :  { %v822_v7 = vpop.f32.mrf.mxu0 }
 0xc98   :  { %v1346_v0 = vpop.f32.mrf.mxu0 }
 0xca2   :  { %v1414_v11 = vpop.eup %1413 }
 0xca3   :  { %828 = vst [vmem:[#allocation9 + $0x70] sm:$0xff] %v1414_v11  ;;  %v831_v8 = vpack.c.bf16 %v1414_v11, %v1414_v11 }
 0xca5   :  { %1364 = vmatmul.mubr.bf16.vlgmr.msra.gmra.mxu1 %v831_v8 }
 0xd65   :  { %v866_v13 = vpop.f32.mrf.mxu1 }
 0xd66   :  { %v872_v14 = vadd.f32 %v866_v13, %v830_v12 }
 0xd67   :  { %v1365_v15 = vpop.f32.mrf.mxu1 }
 0xd68   :  { %1415 = vtanh.f32 %v872_v14 }
 0xd69   :  { %v869_v16 = vpop.f32.mrf.mxu1 }
 0xd6b   :  { %v1366_v17 = vpop.f32.mrf.mxu1 }
 0xd75   :  { %v1416_v18 = vpop.eup %1415 }
 0xd76   :  { %875 = vst [vmem:[#allocation9 + $0x78] sm:$0xff] %v1416_v18 }
 0xd77   :  { %1488 = shalt.err (!%p1485_p5)
}
 0xd78   :  { %888 = dma.vmem_to_hbm [thread:$0]  %s883_s2, 2048, %s1858_s3, [#allocation5], %s1505_s20, %s1505_s20, %s1506_s21  }
 0xd79   :  { %1501 = dma.done.wait [#allocation5], 2048  }
 0xd7a   :  { %1502 = vsyncadd [#allocation5], 4294965248 }
 0xd7b   :  { %892 = vsyncpa [#allocation4], 1 }
 0xd7c   :  { %893 = vsyncpa [#allocation7], 1 }
 0xd7d   :  { %894 = vsyncpa [#allocation5], 1 }

</bundles_post_ra>
